<compile_context>
chip_gen: v6e
topology: v6e:2x2x1
jax: 0.10.0
libtpu: 0.0.40
codegen_flags: <defaults>
</compile_context>

<pallas_src>
import math

import jax
import jax.numpy as jnp
from jax.experimental import pallas as pl
from jax.experimental.pallas import tpu as pltpu


# ---------------------------------------------------------------------------
# Kernels
# ---------------------------------------------------------------------------
def _matmul_kernel(x_ref, w1_ref, w2_ref, b2_ref, o_ref):
    """h = sin(x @ W1); y = h @ W2 + b2.  Packed and generic (din>1) paths."""
    h = jnp.sin(jnp.dot(x_ref[...], w1_ref[...],
                        preferred_element_type=jnp.float32))
    y = jnp.dot(h, w2_ref[...], preferred_element_type=jnp.float32) + b2_ref[...]
    o_ref[...] = y.astype(o_ref.dtype)


def _bcast_kernel(x_ref, w1_ref, w2_ref, b2_ref, o_ref):
    """Natural path, input_dim == 1: lin1 is an outer product -> VPU broadcast
    multiply (no K=1 MXU dispatch on the critical path)."""
    h = jnp.sin(x_ref[...] * w1_ref[...])            # (tb,1)*(1,emb) -> (tb,emb)
    y = jnp.dot(h, w2_ref[...], preferred_element_type=jnp.float32) + b2_ref[...]
    o_ref[...] = y.astype(o_ref.dtype)


# ---------------------------------------------------------------------------
# Small helpers
# ---------------------------------------------------------------------------
def _cdiv(a, b):
    return -(-a // b)


def _round_up(x, m):
    return _cdiv(x, m) * m


_TARGET_TILE_ROWS = 8192          # upper target; always capped by VMEM budget
_VMEM_BUDGET = 24 * 1024 * 1024   # working-set budget (headroom under limit)
_VMEM_LIMIT = 32 * 1024 * 1024    # safe on v5e/v6e (128 MiB phys) and v7x (64 MiB)
_MAX_PACK_LANES = 512             # replicated W2 <= lanes^2 * 4B = 1 MiB


def _compiler_params():
    return pltpu.CompilerParams(
        dimension_semantics=("parallel",),   # megacore split of the batch axis
        vmem_limit_bytes=_VMEM_LIMIT,
    )


def _even_tiles(n_rows, target_rows, sub):
    """Split n_rows into equal sublane-aligned tiles, minimizing padding and
    guaranteeing >=2 (preferably even) grid steps when there is enough work."""
    n_rows = max(int(n_rows), 1)
    r_min = _round_up(n_rows, sub)
    target = max(sub, (int(target_rows) // sub) * sub)
    n_tiles = _cdiv(r_min, target)
    if n_tiles == 1 and r_min >= 2 * sub:
        n_tiles = 2                      # let both v7x cores do work
    elif n_tiles > 2 and n_tiles % 2 == 1:
        n_tiles += 1                     # even step count for the 2-core split
    tile = _round_up(_cdiv(r_min, n_tiles), sub)
    n_tiles = _cdiv(r_min, tile)
    return tile, tile * n_tiles, n_tiles


def _cost(rows, k1, lanes, in_out_bytes, weight_bytes):
    # Advisory only.  "transcendentals" counts the sin calls even though the
    # TPU lowers sin on the VPU, not the EUP.
    return pl.CostEstimate(
        flops=int(2 * rows * k1 * lanes + 2 * rows * lanes * lanes + rows * lanes),
        transcendentals=int(rows * lanes),
        bytes_accessed=int(in_out_bytes + weight_bytes),
    )


# ---------------------------------------------------------------------------
# Parameter packing (done ONCE, outside the hot path)
# ---------------------------------------------------------------------------
def pack_params(w1, w2, b2, dtype=None):
    """Convert PyTorch-layout params (w1:[emb,din], w2:[emb,emb], b2:[emb]) to
    the kernel layout once, so the forward pass never re-transposes weights.

    dtype=jnp.bfloat16 halves the resident weight footprint on v6e/v7x (matmul
    accumulation / sin / bias stay f32).  Keep dtype=None (f32) on v5e: its VPU
    has no bf16 arithmetic and the weights never touch HBM in steady state.
    """
    emb, din = w1.shape
    if dtype is not None:
        w1, w2, b2 = w1.astype(dtype), w2.astype(dtype), b2.astype(dtype)
    w1t, w2t = w1.T, w2.T                                   # [din,emb], [emb,emb]

    lanes = emb * 128 // math.gcd(emb, 128)                 # lcm(emb, 128)
    p = lanes // emb
    if p > 1 and lanes <= _MAX_PACK_LANES:
        # Lane-dense path: pack p batch rows per lanes-wide output row via
        # block-diagonal weight replicas -> every store is an unmasked vst.
        eye = jnp.eye(p, dtype=w1t.dtype)
        return dict(mode="packed", pack=p, lanes=lanes, emb=emb, din=din,
                    w1=jnp.kron(eye, w1t),                  # (p*din, lanes)
                    w2=jnp.kron(eye, w2t),                  # (lanes, lanes)
                    b2=jnp.tile(b2, p).reshape(1, lanes))   # (1, lanes)
    # p == 1 (emb already a multiple of 128 -> natural path is lane-dense), or
    # the replica cap was exceeded.
    # TODO(synk): for very large emb with masked stores, fuse the downstream
    # consumer instead of widening.
    return dict(mode="natural", emb=emb, din=din,
                w1=w1t, w2=w2t, b2=b2.reshape(1, emb))


# ---------------------------------------------------------------------------
# Forward wrappers
# ---------------------------------------------------------------------------
def _time_siren_packed(x, params, out_dtype):
    B, din = x.shape
    emb, p, lanes = params["emb"], params["pack"], params["lanes"]
    x_isz = jnp.dtype(x.dtype).itemsize
    o_isz = jnp.dtype(out_dtype).itemsize
    sub = 16 if min(x_isz, o_isz) < 4 else 8

    # VMEM budget per packed row: 2x lane-padded input buf + 2x output buf
    # + 1x f32 sin(x@W1) intermediate.
    per_row = (2 * _round_up(p * din, 128) * x_isz
               + 2 * lanes * o_isz
               + lanes * 4)
    tr_cap = max(sub, (_VMEM_BUDGET // per_row) // sub * sub)

    R = _cdiv(B, p)                                     # packed rows needed
    tr, r_pad, n_tiles = _even_tiles(R, min(_TARGET_TILE_ROWS, tr_cap), sub)
    b_pad = r_pad * p

    if b_pad != B:
        x = jnp.pad(x, ((0, b_pad - B), (0, 0)))        # pad rows -> y = b2, sliced off
    xw = x.reshape(r_pad, p * din)                      # free: same row-major layout

    w1b, w2b, b2w = params["w1"], params["w2"], params["b2"]
    wbytes = sum(int(a.size) * a.dtype.itemsize for a in (w1b, w2b, b2w))

    out = pl.pallas_call(
        _matmul_kernel,
        out_shape=jax.ShapeDtypeStruct((r_pad, lanes), out_dtype),
        grid=(n_tiles,),
        in_specs=[
            pl.BlockSpec((tr, p * din), lambda i: (i, 0)),
            pl.BlockSpec((p * din, lanes), lambda i: (0, 0)),   # VMEM-resident
            pl.BlockSpec((lanes, lanes), lambda i: (0, 0)),     # VMEM-resident
            pl.BlockSpec((1, lanes), lambda i: (0, 0)),         # VMEM-resident
        ],
        out_specs=pl.BlockSpec((tr, lanes), lambda i: (i, 0)),
        compiler_params=_compiler_params(),
        cost_estimate=_cost(r_pad, p * din, lanes,
                            r_pad * p * din * x_isz + r_pad * lanes * o_isz,
                            wbytes),
    )(xw, w1b, w2b, b2w)

    # (r_pad, lanes) and (b_pad, emb) share the same row-major layout: free reshape.
    return out.reshape(b_pad, emb)[:B]


def _time_siren_natural(x, params, out_dtype):
    B, din = x.shape
    emb = params["emb"]
    x_isz = jnp.dtype(x.dtype).itemsize
    o_isz = jnp.dtype(out_dtype).itemsize
    sub = 16 if min(x_isz, o_isz) < 4 else 8

    emb_pad = _round_up(emb, 128)                       # lane-padded VMEM width
    per_row = (2 * _round_up(din, 128) * x_isz
               + 2 * emb_pad * o_isz
               + emb_pad * 4)
    tb_cap = max(sub, (_VMEM_BUDGET // per_row) // sub * sub)

    tb, b_pad, n_tiles = _even_tiles(B, min(_TARGET_TILE_ROWS, tb_cap), sub)
    if b_pad != B:
        x = jnp.pad(x, ((0, b_pad - B), (0, 0)))

    w1t, w2t, b2r = params["w1"], params["w2"], params["b2"]
    kernel = _bcast_kernel if din == 1 else _matmul_kernel
    wbytes = sum(int(a.size) * a.dtype.itemsize for a in (w1t, w2t, b2r))

    out = pl.pallas_call(
        kernel,
        out_shape=jax.ShapeDtypeStruct((b_pad, emb), out_dtype),
        grid=(n_tiles,),
        in_specs=[
            pl.BlockSpec((tb, din), lambda i: (i, 0)),
            pl.BlockSpec((din, emb), lambda i: (0, 0)),         # VMEM-resident
            pl.BlockSpec((emb, emb), lambda i: (0, 0)),         # VMEM-resident
            pl.BlockSpec((1, emb), lambda i: (0, 0)),           # VMEM-resident
        ],
        out_specs=pl.BlockSpec((tb, emb), lambda i: (i, 0)),
        compiler_params=_compiler_params(),
        cost_estimate=_cost(b_pad, din, emb,
                            b_pad * din * x_isz + b_pad * emb * o_isz,
                            wbytes),
    )(x, w1t, w2t, b2r)
    return out[:B]


def time_siren(x, params, out_dtype=None):
    """x: [B, input_dim]; params from pack_params().  Returns [B, emb_dim].
    out_dtype=jnp.bfloat16 halves the dominant HBM store traffic on v6e/v7x."""
    B, din = x.shape
    assert din == params["din"], "input_dim mismatch"
    out_dtype = x.dtype if out_dtype is None else out_dtype
    if params["mode"] == "packed":
        return _time_siren_packed(x, params, out_dtype)
    return _time_siren_natural(x, params, out_dtype)


# ---------------------------------------------------------------------------
# Init (PyTorch nn.Linear-style) and self-test
# ---------------------------------------------------------------------------
def init_params(key, input_dim, emb_dim, dtype=jnp.float32):
    k1, k2, k3 = jax.random.split(key, 3)
    b1 = 1.0 / math.sqrt(input_dim)
    b2b = 1.0 / math.sqrt(emb_dim)
    w1 = jax.random.uniform(k1, (emb_dim, input_dim), dtype, -b1, b1)
    w2 = jax.random.uniform(k2, (emb_dim, emb_dim), dtype, -b2b, b2b)
    b2 = jax.random.uniform(k3, (emb_dim,), dtype, -b2b, b2b)
    return w1, w2, b2


def _check(x, w1, w2, b2, expect_mode):
    params = pack_params(w1, w2, b2)
    assert params["mode"] == expect_mode, (params["mode"], expect_mode)
    y = jax.block_until_ready(time_siren(x, params))
    y_ref = jnp.sin(x @ w1.T) @ w2.T + b2
    assert y.shape == y_ref.shape
    assert jnp.allclose(y, y_ref, atol=1e-5, rtol=1e-5), \
        float(jnp.max(jnp.abs(y - y_ref)))


if __name__ == "__main__":
    key = jax.random.PRNGKey(0)
    k1, k2, k3, k4 = jax.random.split(key, 4)

    # 1) packed, emb divides 128 (p=4, 128 lanes): din=1, emb=32, batch=8
    kx, kp = jax.random.split(k1)
    x = jax.random.uniform(kx, (8, 1), jnp.float32)
    _check(x, *init_params(kp, 1, 32), expect_mode="packed")

    # 2) packed via lcm (emb=48 -> 384 lanes, p=8): din=2, emb=48, batch=10
    kx, kp = jax.random.split(k2)
    x = jax.random.uniform(kx, (10, 2), jnp.float32)
    _check(x, *init_params(kp, 2, 48), expect_mode="packed")

    # 3) natural fallback (lcm(80,128)=640 > cap), din=1 -> VPU lin1
    kx, kp = jax.random.split(k3)
    x = jax.random.uniform(kx, (10, 1), jnp.float32)
    _check(x, *init_params(kp, 1, 80), expect_mode="natural")

    # 4) natural fallback with din>1 (MXU lin1): din=3, emb=200, batch=12
    kx, kp = jax.random.split(k4)
    x = jax.random.uniform(kx, (12, 3), jnp.float32)
    _check(x, *init_params(kp, 3, 200), expect_mode="natural")

    print("KERNEL_OK")
</pallas_src>

<mosaic_0001>
module attributes {stable_mosaic.version = 11 : i64} {
  func.func @_matmul_kernel(%arg0: i32, %arg1: memref<8x4xf32, #tpu.memory_space<vmem>>, %arg2: memref<4x128xf32, #tpu.memory_space<vmem>>, %arg3: memref<128x128xf32, #tpu.memory_space<vmem>>, %arg4: memref<1x128xf32, #tpu.memory_space<vmem>>, %arg5: memref<8x128xf32, #tpu.memory_space<vmem>>) attributes {dimension_semantics = [#tpu.dimension_semantics<parallel>], iteration_bounds = array<i64: 1>, scalar_prefetch = 0 : i64, scratch_operands = 0 : i64, tpu.core_type = #tpu.core_type<tc>, window_params = [{transform_indices = @transform_0, window_bounds = array<i64: 8, 4>}, {pipeline_mode = #tpu.pipeline_mode<synchronous>, transform_indices = @transform_1, window_bounds = array<i64: 4, 128>}, {pipeline_mode = #tpu.pipeline_mode<synchronous>, transform_indices = @transform_2, window_bounds = array<i64: 128, 128>}, {pipeline_mode = #tpu.pipeline_mode<synchronous>, transform_indices = @transform_3, window_bounds = array<i64: 1, 128>}, {transform_indices = @transform_4, window_bounds = array<i64: 8, 128>}]} {
    %c0 = arith.constant 0 : index
    %c0_0 = arith.constant 0 : index
    %0 = vector.load %arg1[%c0, %c0_0] : memref<8x4xf32, #tpu.memory_space<vmem>>, vector<8x4xf32>
    %c0_1 = arith.constant 0 : index
    %c0_2 = arith.constant 0 : index
    %1 = vector.load %arg2[%c0_1, %c0_2] : memref<4x128xf32, #tpu.memory_space<vmem>>, vector<4x128xf32>
    %cst = arith.constant dense<0.000000e+00> : vector<8x128xf32>
    %2 = tpu.matmul %0, %1, %cst {dimension_numbers = #tpu.dot_dimension_numbers<[1], [0], [0], [1], [0, 0, 1, 1], [], []>} : vector<8x4xf32>, vector<4x128xf32>, vector<8x128xf32> -> vector<8x128xf32>
    %3 = math.sin %2 : vector<8x128xf32>
    %c0_3 = arith.constant 0 : index
    %c0_4 = arith.constant 0 : index
    %4 = vector.load %arg3[%c0_3, %c0_4] : memref<128x128xf32, #tpu.memory_space<vmem>>, vector<128x128xf32>
    %cst_5 = arith.constant dense<0.000000e+00> : vector<8x128xf32>
    %5 = tpu.matmul %3, %4, %cst_5 {dimension_numbers = #tpu.dot_dimension_numbers<[1], [0], [0], [1], [0, 0, 1, 1], [], []>} : vector<8x128xf32>, vector<128x128xf32>, vector<8x128xf32> -> vector<8x128xf32>
    %c0_6 = arith.constant 0 : index
    %c0_7 = arith.constant 0 : index
    %6 = vector.load %arg4[%c0_6, %c0_7] : memref<1x128xf32, #tpu.memory_space<vmem>>, vector<1x128xf32>
    %7 = vector.broadcast %6 : vector<1x128xf32> to vector<8x128xf32>
    %8 = arith.addf %5, %7 : vector<8x128xf32>
    %c0_8 = arith.constant 0 : index
    %c0_9 = arith.constant 0 : index
    %9 = vector.load %arg5[%c0_8, %c0_9] : memref<8x128xf32, #tpu.memory_space<vmem>>, vector<8x128xf32>
    tpu.vector_store %arg5[%c0_8, %c0_9], %8 {strides = array<i32>} : memref<8x128xf32, #tpu.memory_space<vmem>>, vector<8x128xf32>,
    return
  }
  func.func @transform_0(%arg0: i32) -> (i32, i32) {
    %c0_i32 = arith.constant 0 : i32
    %c0_i32_0 = arith.constant 0 : i32
    return %arg0, %c0_i32 : i32, i32
  }
  func.func @transform_1(%arg0: i32) -> (i32, i32) {
    %c0_i32 = arith.constant 0 : i32
    %c0_i32_0 = arith.constant 0 : i32
    %c0_i32_1 = arith.constant 0 : i32
    return %c0_i32, %c0_i32_0 : i32, i32
  }
  func.func @transform_2(%arg0: i32) -> (i32, i32) {
    %c0_i32 = arith.constant 0 : i32
    %c0_i32_0 = arith.constant 0 : i32
    %c0_i32_1 = arith.constant 0 : i32
    return %c0_i32, %c0_i32_0 : i32, i32
  }
  func.func @transform_3(%arg0: i32) -> (i32, i32) {
    %c0_i32 = arith.constant 0 : i32
    %c0_i32_0 = arith.constant 0 : i32
    %c0_i32_1 = arith.constant 0 : i32
    return %c0_i32, %c0_i32_0 : i32, i32
  }
  func.func @transform_4(%arg0: i32) -> (i32, i32) {
    %c0_i32 = arith.constant 0 : i32
    %c0_i32_0 = arith.constant 0 : i32
    return %arg0, %c0_i32 : i32, i32
  }
}

</mosaic_0001>

<bundles_post_ra>
// kernel: tpu_custom_call.1
= control target key start
LH: loop header
LB: loop body
LE: loop exit
PB: predicated region body
PF: predicated region fallthrough
CT: control target
= control target key end

     0   :  { %9 = vsyncpa [#allocation3], 0  ;;  %s528_s0 = inlined_call_operand.vmem [shape: f32[8,4], index: 0, kind: input, shape index: {}]   ;;  %s529_s1 = inlined_call_operand.vmem [shape: f32[4,128], index: 1, kind: input, shape index: {}]   ;;  %s530_s2 = inlined_call_operand.hbm [shape: f32[128,128], index: 2, kind: input, shape index: {}]   ;;  %s531_s3 = inlined_call_operand.vmem [shape: f32[1,128], index: 3, kind: input, shape index: {}]   ;;  %s532_s4 = inlined_call_operand.hbm [shape: f32[8,128], index: 4, kind: output, shape index: {}]  }
   0x1   :  { %10 = vsyncpa [#allocation4], 0  ;;  %s455_s15 = smov [#allocation2]  }
   0x2   :  { %s20_s16 = sshll.u32 %s455_s15, 4  ;;  %s21_s16 = int_to_ptr.vmem [resolvable:$true] %s20_s16 }
   0x3   :  { %s419_s17 = scalar_lea.vmem %s21_s16, 2048  ;;  %p424_p1 = scmp.lt.s32.totalorder %s21_s16, %s21_s16 }
   0x4   :  { %p420_p0 = scmp.ne.s32.totalorder %s21_s16, %s419_s17  ;;  %p425_p2 = scmp.lt.s32.totalorder %s419_s17, %s419_s17 }
   0x6   :  { %p426_p3 = por %p425_p2, %p424_p1 }
   0x8   :  { %p427_p4 = pnand %p426_p3, %p420_p0 }
   0xa   :  { %430 = shalt.err (!%p427_p4)
}
   0xb   :  { %s456_s18 = smov 128   ;;  %s457_s19 = smov 8  }
   0xc   :  { %26 = dma.hbm_to_vmem [thread:$0]  %s530_s2, 2048, %s21_s16, [#allocation3], %s456_s18, %s456_s18, %s457_s19  }
   0xd   :  { %451 = dma.done.wait [#allocation3], 2048  }
   0xe   :  { %452 = vsyncadd [#allocation3], 4294965248  ;;  %v458_v0 = vmov 0.0   ;;  %vm459_vm0 = vmmov 0   ;;  %vm38_vm1 = vcmask 1043456   ;;  %vm34_vm2 = vcmask 31744  }
   0xf   :  { %351 = vmatprep.subr.mxu0 %v458_v0  ;;  %353 = vmatprep.mubr.msk.f32.mxu0 %vm459_vm0, %v458_v0  ;;  %v33_v1 = vld [vmem:[%s529_s1] sm:$0xf]  ;;  %v231_v3 = vld [vmem:[#allocation2 + $0x78] sm:$0xff]  ;;  %v230_v4 = vld [vmem:[#allocation2 + $0x70] sm:$0xff]  ;;  %v460_v31 = vmov 683565275  }
  0x10   :  { %356 = vmatprep.subr.mxu1 %v458_v0  ;;  %388 = vmatprep.mubr.msk.f32.mxu1 %vm459_vm0, %v458_v0  ;;  %v32_v2 = vld [vmem:[%s528_s0] sm:$0xff]  ;;  %v229_v5 = vld [vmem:[#allocation2 + $0x68] sm:$0xff]  ;;  %v227_v7 = vld [vmem:[#allocation2 + $0x58] sm:$0xff]  ;;  %v461_v33 = vmov 2475754826   ;;  %s466_s2 = smov [#allocation5]  }
  0x11   :  { %352 = vmatpush3.msk.msra.mxu0 %vm38_vm1, %v33_v1  ;;  %357 = vmatpush3.msra.mxu1 %v231_v3  ;;  %v228_v6 = vld [vmem:[#allocation2 + $0x60] sm:$0xff]  ;;  %v226_v8 = vld [vmem:[#allocation2 + $0x50] sm:$0xff]  ;;  %v225_v9 = vld [vmem:[#allocation2 + $0x48] sm:$0xff]  ;;  %v462_v36 = vmov 2131351028   ;;  %s316_s26 = sshll.u32 %s466_s2, 4  ;;  %s317_s26 = int_to_ptr.vmem [resolvable:$true] %s316_s26 }
  0x12   :  { %354 = vmatmul.mubr.msk.f32.vlgmr.msra.gmra.mxu0 %vm34_vm2, %v32_v2  ;;  %358 = vmatprep.subr.mxu1 %v458_v0  ;;  %v224_v10 = vld [vmem:[#allocation2 + $0x40] sm:$0xff]  ;;  %v223_v11 = vld [vmem:[#allocation2 + $0x38] sm:$0xff]  ;;  %v222_v12 = vld [vmem:[#allocation2 + $0x30] sm:$0xff]  ;;  %v463_v39 = vmov 2102212464   ;;  %s431_s27 = scalar_lea.vmem %s317_s26, 128  ;;  %p436_p6 = scmp.lt.s32.totalorder %s317_s26, %s317_s26 }
  0x13   :  { %359 = vmatpush3.msra.mxu1 %v230_v4  ;;  %v221_v13 = vld [vmem:[#allocation2 + $0x28] sm:$0xff]  ;;  %v220_v14 = vld [vmem:[#allocation2 + $0x20] sm:$0xff]  ;;  %v219_v15 = vld [vmem:[#allocation2 + $0x18] sm:$0xff]  ;;  %v464_v42 = vmov 920167782   ;;  %p432_p5 = scmp.ne.s32.totalorder %s317_s26, %s431_s27  ;;  %p437_p7 = scmp.lt.s32.totalorder %s431_s27, %s431_s27 }
  0x14   :  { %360 = vmatprep.subr.mxu1 %v458_v0  ;;  %v218_v16 = vld [vmem:[#allocation2 + $0x10] sm:$0xff]  ;;  %v217_v17 = vld [vmem:[#allocation2 + $0x8] sm:$0xff]  ;;  %v216_v18 = vld [vmem:[#allocation2] sm:$0xff]  ;;  %v465_v45 = vmov 1326507024  }
  0x15   :  { %361 = vmatpush3.msra.mxu1 %v229_v5  ;;  %p438_p8 = por %p437_p7, %p436_p6 }
  0x16   :  { %362 = vmatprep.subr.mxu1 %v458_v0 }
  0x17   :  { %363 = vmatpush3.msra.mxu1 %v228_v6  ;;  %p439_p9 = pnand %p438_p8, %p432_p5 }
  0x18   :  { %364 = vmatprep.subr.mxu1 %v458_v0 }
  0x19   :  { %365 = vmatpush3.msra.mxu1 %v227_v7 }
  0x1a   :  { %366 = vmatprep.subr.mxu1 %v458_v0 }
  0x1b   :  { %367 = vmatpush3.msra.mxu1 %v226_v8 }
  0x1c   :  { %368 = vmatprep.subr.mxu1 %v458_v0 }
  0x1d   :  { %369 = vmatpush3.msra.mxu1 %v225_v9 }
  0x1e   :  { %370 = vmatprep.subr.mxu1 %v458_v0 }
  0x1f   :  { %371 = vmatpush3.msra.mxu1 %v224_v10 }
  0x20   :  { %372 = vmatprep.subr.mxu1 %v458_v0 }
  0x21   :  { %373 = vmatpush3.msra.mxu1 %v223_v11 }
  0x22   :  { %374 = vmatprep.subr.mxu1 %v458_v0 }
  0x23   :  { %375 = vmatpush3.msra.mxu1 %v222_v12 }
  0x24   :  { %376 = vmatprep.subr.mxu1 %v458_v0 }
  0x25   :  { %377 = vmatpush3.msra.mxu1 %v221_v13 }
  0x26   :  { %378 = vmatprep.subr.mxu1 %v458_v0 }
  0x27   :  { %379 = vmatpush3.msra.mxu1 %v220_v14 }
  0x28   :  { %380 = vmatprep.subr.mxu1 %v458_v0 }
  0x29   :  { %381 = vmatpush3.msra.mxu1 %v219_v15 }
  0x2a   :  { %382 = vmatprep.subr.mxu1 %v458_v0 }
  0x2b   :  { %383 = vmatpush3.msra.mxu1 %v218_v16 }
  0x2c   :  { %384 = vmatprep.subr.mxu1 %v458_v0 }
  0x2d   :  { %385 = vmatpush3.msra.mxu1 %v217_v17 }
  0x2e   :  { %386 = vmatprep.subr.mxu1 %v458_v0 }
  0x2f   :  { %387 = vmatpush3.msra.mxu1 %v216_v18 }
  0xd2   :  { %v501_v19 = vpop.f32.mrf.mxu0 }
  0xd3   :  { %v115_v20 = vand.u32 2139095040, %v501_v19  ;;  %v112_v25 = vand.u32 2147483647, %v501_v19  ;;  %vm114_vm10 = vcmp.lt.s32.totalorder %v501_v19, 0  ;;  %vm204_vm15 = vweird.f32 %v501_v19 }
  0xd4   :  { %v355_v21 = vpop.f32.mrf.mxu0 }
  0xd5   :  { %v116_v22 = vshrl.u32 %v115_v20, 23  ;;  %v119_v28 = vand.u32 8388607, %v112_v25  ;;  %vm113_vm11 = vcmp.le.f32.partialorder %v112_v25, 0.7853982 }
  0xd7   :  { %v327_v23 = vadd.s32 4294967169, %v116_v22  ;;  %v120_v47 = vor.u32 8388608, %v119_v28 }
  0xd9   :  { %v122_v24 = vadd.s32 1, %v327_v23  ;;  %v160_v61 = vshll.u32 %v120_v47, 8 }
  0xdb   :  { %vm123_vm3 = vcmp.gt.s32.totalorder %v122_v24, 0 }
  0xdc   :  { %v124_v26 = vsel %vm123_vm3, %v122_v24, 0 }
  0xdd   :  { %v126_v27 = vand.u32 31, %v124_v26  ;;  %v125_v30 = vshrl.u32 %v124_v26, 5 }
  0xdf   :  { %v127_v29 = vsub.s32 32, %v126_v27  ;;  %v129_v32 = vshll.u32 %v460_v31, %v126_v27  ;;  %v132_v34 = vshll.u32 %v461_v33, %v126_v27  ;;  %v135_v38 = vshll.u32 %v462_v36, %v126_v27 }
  0xe0   :  { %v138_v41 = vshll.u32 %v463_v39, %v126_v27  ;;  %v141_v44 = vshll.u32 %v464_v42, %v126_v27  ;;  %vm144_vm4 = vcmp.lt.s32.totalorder %v125_v30, 1  ;;  %vm147_vm5 = vcmp.lt.s32.totalorder %v125_v30, 4 }
  0xe1   :  { %v130_v35 = vshrl.u32 %v461_v33, %v127_v29  ;;  %v133_v37 = vshrl.u32 %v462_v36, %v127_v29  ;;  %v136_v40 = vshrl.u32 %v463_v39, %v127_v29  ;;  %v139_v43 = vshrl.u32 %v464_v42, %v127_v29 }
  0xe2   :  { %v142_v46 = vshrl.u32 %v465_v45, %v127_v29  ;;  %v128_v56 = vshrl.u32 %v460_v31, %v127_v29  ;;  %vm146_vm6 = vcmp.lt.s32.totalorder %v125_v30, 3  ;;  %vm145_vm7 = vcmp.lt.s32.totalorder %v125_v30, 2 }
  0xe3   :  { %v131_v48 = vor.u32 %v130_v35, %v129_v32  ;;  %v134_v49 = vor.u32 %v133_v37, %v132_v34  ;;  %v137_v50 = vor.u32 %v136_v40, %v135_v38  ;;  %v140_v51 = vor.u32 %v139_v43, %v138_v41 }
  0xe4   :  { %v143_v52 = vor.u32 %v142_v46, %v141_v44 }
  0xe5   :  { %v149_v53 = vsel %vm147_vm5, %v137_v50, 2102212464  ;;  %v152_v54 = vsel %vm144_vm4, %v131_v48, %v134_v49  ;;  %v156_v55 = vsel %vm144_vm4, %v134_v49, %v137_v50  ;;  %v153_v57 = vsel %vm147_vm5, %v140_v51, 920167782 }
  0xe6   :  { %v157_v58 = vsel %vm147_vm5, %v143_v52, 1326507024  ;;  %v154_v59 = vsel %vm146_vm6, %v137_v50, %v153_v57  ;;  %v148_v62 = vsel %vm144_vm4, %v128_v56, %v131_v48  ;;  %v150_v63 = vsel %vm146_vm6, %v134_v49, %v149_v53  ;;  %v331_v49 = vld [vmem:[%s531_s3] ss:$0 sm:$0xff] }
  0xe7   :  { %v158_v60 = vsel %vm146_vm6, %v140_v51, %v157_v58  ;;  %v155_v0 = vsel %vm145_vm7, %v152_v54, %v154_v59  ;;  %v151_v6 = vsel %vm145_vm7, %v148_v62, %v150_v63 }
  0xe8   :  { %v159_v1 = vsel %vm145_vm7, %v156_v55, %v158_v60  ;;  %v510_v4 = vmul.u32.u64.low %v160_v61, %v155_v0  ;;  %v511_v5 = vmul.u32.u64.high %v160_v61, %v155_v0, %v510_v4  ;;  %v167_v8 = vmul.u32 %v160_v61, %v151_v6 }
  0xe9   :  { %v507_v2 = vmul.u32.u64.low %v160_v61, %v159_v1  ;;  %v508_v3 = vmul.u32.u64.high %v160_v61, %v159_v1, %v507_v2 }
  0xea   :  { %v170_v7 = vadd.s32 1, %v511_v5 }
  0xeb   :  { %vm169_vm8 = vc.u32 %v508_v3, %v510_v4  ;;  %v168_v21 = vadd.s32 %v510_v4, %v508_v3 }
  0xec   :  { %v171_v9 = vsel %vm169_vm8, %v170_v7, %v511_v5 }
  0xed   :  { %v172_v10 = vadd.s32 %v171_v9, %v167_v8 }
  0xef   :  { %v173_v11 = vadd.s32 536870912, %v172_v10 }
  0xf1   :  { %v174_v12 = vshrl.u32 %v173_v11, 30 }
  0xf3   :  { %v175_v13 = vshll.u32 %v174_v12, 30  ;;  %v198_v35 = vsub.s32 4, %v174_v12 }
  0xf5   :  { %v176_v14 = vsub.s32 %v172_v10, %v175_v13  ;;  %v199_v38 = vsel %vm114_vm10, %v198_v35, %v174_v12 }
  0xf6   :  { %v201_v39 = vsel %vm113_vm11, 0, %v199_v38 }
  0xf7   :  { %v178_v15 = vsub.s32 0, %v176_v14  ;;  %v205_v40 = vadd.s32 3, %v201_v39 }
  0xf9   :  { %v328_v16 = vmin.u32 %v178_v15, %v176_v14  ;;  %v206_v41 = vand.u32 3, %v205_v40 }
  0xfb   :  { %v180_v17 = vclz %v328_v16  ;;  %vm211_vm12 = vcmp.eq.s32.totalorder %v206_v41, 2  ;;  %vm208_vm13 = vcmp.eq.s32.totalorder %v206_v41, 0  ;;  %vm207_vm14 = vcmp.lt.s32.totalorder %v206_v41, 2 }
  0xfd   :  { %v329_v18 = vadd.s32 4294967294, %v180_v17 }
  0xff   :  { %vm330_vm9 = vcmp.lt.s32.totalorder %v329_v18, 0 }
 0x100   :  { %v183_v20 = vsel %vm330_vm9, 0, %v329_v18 }
 0x101   :  { %v184_v22 = vsub.s32 32, %v183_v20  ;;  %v188_v23 = vsub.s32 4294967266, %v183_v20  ;;  %v185_v24 = vshll.u32 %v176_v14, %v183_v20 }
 0x103   :  { %v186_v26 = vshrl.u32 %v168_v21, %v184_v22  ;;  %v189_v27 = vadd.s32 127, %v188_v23 }
 0x105   :  { %v187_v28 = vor.u32 %v186_v26, %v185_v24  ;;  %v190_v29 = vshll.u32 %v189_v27, 23 }
 0x107   :  { %v191_v30 = vor.u32 4788187, %v190_v29  ;;  %v194_v32 = vcvt.s32.f32 %v187_v28 }
 0x109   :  { %v192_v31 = vand.u32 2147483647, %v191_v30 }
 0x10b   :  { %v195_v33 = vmul.f32 %v194_v32, %v192_v31 }
 0x10d   :  { %v196_v34 = vxor.u32 2147483648, %v195_v33 }
 0x10f   :  { %v197_v36 = vsel %vm114_vm10, %v196_v34, %v195_v33 }
 0x110   :  { %v200_v37 = vsel %vm113_vm11, %v501_v19, %v197_v36 }
 0x111   :  { %407 = vcosq.f32 %v200_v37 }
 0x112   :  { %409 = vsinq.f32 %v200_v37 }
 0x11e   :  { %v408_v42 = vpop.eup %407 }
 0x11f   :  { %v410_v43 = vpop.eup %409  ;;  %v212_v44 = vxor.u32 2147483648, %v408_v42 }
 0x120   :  { %v209_v45 = vxor.u32 2147483648, %v410_v43 }
 0x121   :  { %v213_v46 = vsel %vm211_vm12, %v212_v44, %v410_v43 }
 0x122   :  { %v210_v47 = vsel %vm208_vm13, %v408_v42, %v209_v45 }
 0x123   :  { %v214_v25 = vsel %vm207_vm14, %v210_v47, %v213_v46 }
 0x124   :  { %v215_v48 = vsel %vm204_vm15, nan, %v214_v25 }
 0x125   :  { %389 = vmatmul.mubr.f32.vlgmr.msra.gmra.mxu1 %v215_v48 }
 0x1e5   :  { %v305_v50 = vpop.f32.mrf.mxu1 }
 0x1e6   :  { %v306_v51 = vadd.f32 %v331_v49, %v305_v50 }
 0x1e7   :  { %v390_v52 = vpop.f32.mrf.mxu1 }
 0x1e8   :  { %309 = vst [vmem:[#allocation5] sm:$0xff] %v306_v51 }
 0x1e9   :  { %442 = shalt.err (!%p439_p9)
}
 0x1ea   :  { %319 = dma.vmem_to_hbm [thread:$0]  %s317_s26, 128, %s532_s4, [#allocation4]  }
 0x1eb   :  { %453 = dma.done.wait [#allocation4], 128  }
 0x1ec   :  { %454 = vsyncadd [#allocation4], 4294967168 }
 0x1ed   :  { %323 = vsyncpa [#allocation3], 1 }
 0x1ee   :  { %324 = vsyncpa [#allocation4], 1 }

</bundles_post_ra>
